<compile_context>
chip_gen: v5e
topology: v5e:2x2
jax: 0.10.0
libtpu: 0.0.40
codegen_flags: <defaults>
</compile_context>

<pallas_src>
import jax
import jax.numpy as jnp
from jax.experimental import pallas as pl
from jax.experimental.pallas import tpu as pltpu


def ca_layer_kernel(x_ref, w1t_ref, b1_ref, w2_ref, b2_ref, o_ref):
    # x_ref:   (1, C, HW)  one batch element; channels on sublanes, spatial on lanes
    # w1t_ref: (C, Cr)     conv1 weight transposed (in-channel on sublanes)
    # b1_ref:  (1, Cr)
    # w2_ref:  (C, Cr)     conv2 weight (out-channel on sublanes, hidden on lanes)
    # b2_ref:  (C, 1)
    # o_ref:   (1, C, HW)
    x = x_ref[0]                                                  # (C, HW) f32
    hw = x.shape[1]
    inv_hw = jnp.float32(1.0 / hw)

    # global average pool over the spatial (lane) axis: sum * (1/HW) constant
    pooled = jnp.sum(x, axis=1, keepdims=True) * inv_hw           # (C, 1)

    # conv1x1 (C -> Cr) + ReLU : reduce over input channels (sublane axis)
    h = jnp.sum(w1t_ref[...] * pooled, axis=0, keepdims=True) + b1_ref[...]   # (1, Cr)
    h = jnp.maximum(h, 0.0)

    # conv1x1 (Cr -> C) + sigmoid : reduce over hidden units (lane axis)
    a = jnp.sum(w2_ref[...] * h, axis=1, keepdims=True) + b2_ref[...]         # (C, 1)
    a = jax.nn.sigmoid(a)

    # channel-wise rescale, broadcast over lanes (spatial); lane-dense store
    o_ref[0] = (x * a).astype(o_ref.dtype)


def ca_layer_forward(x_nchw, conv1_w, conv1_b, conv2_w, conv2_b):
    """CALayer forward.

    x_nchw:  (N, C, H, W)
    conv1_w: (Cr, C, 1, 1), conv1_b: (Cr,)
    conv2_w: (C, Cr, 1, 1), conv2_b: (C,)
    returns  (N, C, H, W)
    """
    N, C, H, W = x_nchw.shape
    Cr = conv1_w.shape[0]
    HW = H * W

    # glue: pure reshapes / tiny weight reshapes only -- no tensor transposes
    x3 = x_nchw.reshape(N, C, HW)
    w1t = conv1_w.reshape(Cr, C).T          # (C, Cr)
    b1r = conv1_b.reshape(1, Cr)
    w2r = conv2_w.reshape(C, Cr)            # (C, Cr)
    b2r = conv2_b.reshape(C, 1)

    # TODO(synk): for very large H*W where a (C, HW) slab would exceed VMEM,
    # split the spatial axis into a pooled-sum pass + a scale pass.
    out3 = pl.pallas_call(
        ca_layer_kernel,
        out_shape=jax.ShapeDtypeStruct((N, C, HW), x3.dtype),
        grid_spec=pltpu.PrefetchScalarGridSpec(
            num_scalar_prefetch=0,
            grid=(N,),
            in_specs=[
                pl.BlockSpec((1, C, HW), lambda n: (n, 0, 0)),
                pl.BlockSpec((C, Cr), lambda n: (0, 0)),
                pl.BlockSpec((1, Cr), lambda n: (0, 0)),
                pl.BlockSpec((C, Cr), lambda n: (0, 0)),
                pl.BlockSpec((C, 1), lambda n: (0, 0)),
            ],
            out_specs=pl.BlockSpec((1, C, HW), lambda n: (n, 0, 0)),
        ),
        compiler_params=pltpu.CompilerParams(
            dimension_semantics=("parallel",)),
    )(x3, w1t, b1r, w2r, b2r)

    return out3.reshape(N, C, H, W)


if __name__ == "__main__":
    # module config: CALayer(channel=64, reduction=16); input NCHW (2, 64, 16, 16)
    N, C, H, W = 2, 64, 16, 16
    reduction = 16
    Cr = C // reduction

    key = jax.random.PRNGKey(0)
    kx, kw1, kb1, kw2, kb2 = jax.random.split(key, 5)

    x = jax.random.normal(kx, (N, C, H, W), dtype=jnp.float32)
    conv1_w = jax.random.normal(kw1, (Cr, C, 1, 1), dtype=jnp.float32) * 0.1
    conv1_b = jax.random.normal(kb1, (Cr,), dtype=jnp.float32) * 0.1
    conv2_w = jax.random.normal(kw2, (C, Cr, 1, 1), dtype=jnp.float32) * 0.1
    conv2_b = jax.random.normal(kb2, (C,), dtype=jnp.float32) * 0.1

    out = ca_layer_forward(x, conv1_w, conv1_b, conv2_w, conv2_b)
    out = jax.block_until_ready(out)

    # reference in plain JAX (same math as the PyTorch module)
    pooled = jnp.mean(x, axis=(2, 3))                                   # (N, C)
    h = jnp.maximum(
        jnp.einsum('jc,nc->nj', conv1_w.reshape(Cr, C), pooled) + conv1_b, 0.0)
    att = jax.nn.sigmoid(
        jnp.einsum('cj,nj->nc', conv2_w.reshape(C, Cr), h) + conv2_b)   # (N, C)
    out_ref = x * att[:, :, None, None]

    assert out.shape == (N, C, H, W)
    assert jnp.max(jnp.abs(out - out_ref)) < 1e-4

    print("KERNEL_OK")
</pallas_src>

<mosaic_0001>
module attributes {stable_mosaic.version = 11 : i64} {
  func.func @ca_layer_kernel(%arg0: i32, %arg1: memref<1x64x256xf32, #tpu.memory_space<vmem>>, %arg2: memref<64x4xf32, #tpu.memory_space<vmem>>, %arg3: memref<1x4xf32, #tpu.memory_space<vmem>>, %arg4: memref<64x4xf32, #tpu.memory_space<vmem>>, %arg5: memref<64x1xf32, #tpu.memory_space<vmem>>, %arg6: memref<1x64x256xf32, #tpu.memory_space<vmem>>) attributes {dimension_semantics = [#tpu.dimension_semantics<parallel>], iteration_bounds = array<i64: 2>, scalar_prefetch = 0 : i64, scratch_operands = 0 : i64, tpu.core_type = #tpu.core_type<tc>, window_params = [{transform_indices = @transform_0, window_bounds = array<i64: 1, 64, 256>}, {pipeline_mode = #tpu.pipeline_mode<synchronous>, transform_indices = @transform_1, window_bounds = array<i64: 64, 4>}, {pipeline_mode = #tpu.pipeline_mode<synchronous>, transform_indices = @transform_2, window_bounds = array<i64: 1, 4>}, {pipeline_mode = #tpu.pipeline_mode<synchronous>, transform_indices = @transform_3, window_bounds = array<i64: 64, 4>}, {pipeline_mode = #tpu.pipeline_mode<synchronous>, transform_indices = @transform_4, window_bounds = array<i64: 64, 1>}, {transform_indices = @transform_5, window_bounds = array<i64: 1, 64, 256>}]} {
    %c0 = arith.constant 0 : index
    %c0_0 = arith.constant 0 : index
    %c0_1 = arith.constant 0 : index
    %0 = vector.load %arg1[%c0, %c0_0, %c0_1] : memref<1x64x256xf32, #tpu.memory_space<vmem>>, vector<1x64x256xf32>
    %1 = vector.shape_cast %0 : vector<1x64x256xf32> to vector<64x256xf32>
    %cst = arith.constant dense<0.000000e+00> : vector<64xf32>
    %2 = vector.multi_reduction <add>, %1, %cst [1] : vector<64x256xf32> to vector<64xf32>
    %3 = vector.shape_cast %2 : vector<64xf32> to vector<64x1xf32>
    %cst_2 = arith.constant 3.906250e-03 : f32
    %4 = vector.broadcast %cst_2 : f32 to vector<64x1xf32>
    %5 = arith.mulf %3, %4 : vector<64x1xf32>
    %c0_3 = arith.constant 0 : index
    %c0_4 = arith.constant 0 : index
    %6 = vector.load %arg2[%c0_3, %c0_4] : memref<64x4xf32, #tpu.memory_space<vmem>>, vector<64x4xf32>
    %7 = vector.broadcast %5 : vector<64x1xf32> to vector<64x4xf32>
    %8 = arith.mulf %6, %7 : vector<64x4xf32>
    %cst_5 = arith.constant dense<0.000000e+00> : vector<4xf32>
    %9 = vector.multi_reduction <add>, %8, %cst_5 [0] : vector<64x4xf32> to vector<4xf32>
    %10 = vector.shape_cast %9 : vector<4xf32> to vector<1x4xf32>
    %c0_6 = arith.constant 0 : index
    %c0_7 = arith.constant 0 : index
    %11 = vector.load %arg3[%c0_6, %c0_7] : memref<1x4xf32, #tpu.memory_space<vmem>>, vector<1x4xf32>
    %12 = arith.addf %10, %11 : vector<1x4xf32>
    %cst_8 = arith.constant 0.000000e+00 : f32
    %13 = vector.broadcast %cst_8 : f32 to vector<1x4xf32>
    %14 = arith.maximumf %12, %13 : vector<1x4xf32>
    %c0_9 = arith.constant 0 : index
    %c0_10 = arith.constant 0 : index
    %15 = vector.load %arg4[%c0_9, %c0_10] : memref<64x4xf32, #tpu.memory_space<vmem>>, vector<64x4xf32>
    %16 = vector.broadcast %14 : vector<1x4xf32> to vector<64x4xf32>
    %17 = arith.mulf %15, %16 : vector<64x4xf32>
    %cst_11 = arith.constant dense<0.000000e+00> : vector<64xf32>
    %18 = vector.multi_reduction <add>, %17, %cst_11 [1] : vector<64x4xf32> to vector<64xf32>
    %19 = vector.shape_cast %18 : vector<64xf32> to vector<64x1xf32>
    %c0_12 = arith.constant 0 : index
    %c0_13 = arith.constant 0 : index
    %20 = vector.load %arg5[%c0_12, %c0_13] : memref<64x1xf32, #tpu.memory_space<vmem>>, vector<64x1xf32>
    %21 = arith.addf %19, %20 : vector<64x1xf32>
    %22 = arith.negf %21 : vector<64x1xf32>
    %23 = math.exp %22 : vector<64x1xf32>
    %cst_14 = arith.constant 1.000000e+00 : f32
    %24 = vector.broadcast %cst_14 : f32 to vector<64x1xf32>
    %25 = arith.addf %24, %23 : vector<64x1xf32>
    %26 = arith.divf %24, %25 : vector<64x1xf32>
    %27 = vector.broadcast %26 : vector<64x1xf32> to vector<64x256xf32>
    %28 = arith.mulf %1, %27 : vector<64x256xf32>
    %c0_15 = arith.constant 0 : index
    %c0_16 = arith.constant 0 : index
    %c0_17 = arith.constant 0 : index
    %29 = vector.load %arg6[%c0_15, %c0_16, %c0_17] : memref<1x64x256xf32, #tpu.memory_space<vmem>>, vector<1x64x256xf32>
    %30 = vector.shape_cast %29 : vector<1x64x256xf32> to vector<64x256xf32>
    %31 = vector.shape_cast %28 : vector<64x256xf32> to vector<1x64x256xf32>
    tpu.vector_store %arg6[%c0_15, %c0_16, %c0_17], %31 {strides = array<i32>} : memref<1x64x256xf32, #tpu.memory_space<vmem>>, vector<1x64x256xf32>,
    return
  }
  func.func @transform_0(%arg0: i32) -> (i32, i32, i32) {
    %c0_i32 = arith.constant 0 : i32
    %c0_i32_0 = arith.constant 0 : i32
    %c0_i32_1 = arith.constant 0 : i32
    return %arg0, %c0_i32, %c0_i32_0 : i32, i32, i32
  }
  func.func @transform_1(%arg0: i32) -> (i32, i32) {
    %c0_i32 = arith.constant 0 : i32
    %c0_i32_0 = arith.constant 0 : i32
    %c0_i32_1 = arith.constant 0 : i32
    return %c0_i32, %c0_i32_0 : i32, i32
  }
  func.func @transform_2(%arg0: i32) -> (i32, i32) {
    %c0_i32 = arith.constant 0 : i32
    %c0_i32_0 = arith.constant 0 : i32
    %c0_i32_1 = arith.constant 0 : i32
    return %c0_i32, %c0_i32_0 : i32, i32
  }
  func.func @transform_3(%arg0: i32) -> (i32, i32) {
    %c0_i32 = arith.constant 0 : i32
    %c0_i32_0 = arith.constant 0 : i32
    %c0_i32_1 = arith.constant 0 : i32
    return %c0_i32, %c0_i32_0 : i32, i32
  }
  func.func @transform_4(%arg0: i32) -> (i32, i32) {
    %c0_i32 = arith.constant 0 : i32
    %c0_i32_0 = arith.constant 0 : i32
    %c0_i32_1 = arith.constant 0 : i32
    return %c0_i32, %c0_i32_0 : i32, i32
  }
  func.func @transform_5(%arg0: i32) -> (i32, i32, i32) {
    %c0_i32 = arith.constant 0 : i32
    %c0_i32_0 = arith.constant 0 : i32
    %c0_i32_1 = arith.constant 0 : i32
    return %arg0, %c0_i32, %c0_i32_0 : i32, i32, i32
  }
}

</mosaic_0001>

<bundles_post_ra>
// kernel: tpu_custom_call.1
= control target key start
LH: loop header
LB: loop body
LE: loop exit
PB: predicated region body
PF: predicated region fallthrough
CT: control target
= control target key end

     0   :  { %10 = vsyncpa [#allocation3], 0  ;;  %s1326_s0 = inlined_call_operand.hbm [shape: f32[2,64,256], index: 0, kind: input, shape index: {}]   ;;  %s1327_s1 = inlined_call_operand.vmem [shape: f32[64,4], index: 1, kind: input, shape index: {}]   ;;  %s1328_s2 = inlined_call_operand.vmem [shape: f32[1,4], index: 2, kind: input, shape index: {}]   ;;  %s1329_s3 = inlined_call_operand.vmem [shape: f32[64,4], index: 3, kind: input, shape index: {}]   ;;  %s1330_s4 = inlined_call_operand.vmem [shape: f32[64,1], index: 4, kind: input, shape index: {}]   ;;  %s1331_s5 = inlined_call_operand.hbm [shape: f32[2,64,256], index: 5, kind: output, shape index: {}]  }
   0x1   :  { %12 = vsyncpa [#allocation3 + $0x1], 0 }
   0x2   :  { %13 = vsyncpa [#allocation4], 0 }
   0x3   :  { %15 = vsyncpa [#allocation4 + $0x1], 0  ;;  %s947_s18 = smov 0   ;;  %s949_s19 = smov 0  }
   0x4   :  { %s951_s20 = smov 0   ;;  %s953_s21 = smov 0  }
   0x5 LB: > { %s968_s22 = sadd.s32 4294967295, %s910_s21   ;;  %s704_s23 = sadd.s32 4294967294, %s910_s21   ;;  %s910_s21 = sphi %s953_s21, %s1343_s21   ;;  %s906_s20 = sphi %s951_s20, %s1342_s20   ;;  %s902_s19 = sphi %s949_s19, %s1341_s19   ;;  %s898_s18 = sphi %s947_s18, %s1340_s18  }
   0x6   : > { %s972_s24 = sadd.s32 1, %s910_s21   ;;  %s28_s25 = sadd.s32 1, %s906_s20 }
   0x7   : > { %s25_s26 = ssub.s32 %s910_s21, %s972_s24  ;;  %p35_p0 = scmp.ne.s32.totalorder %s906_s20, %s902_s19 }
   0x8   : > { %p26_p1 = scmp.eq.s32.totalorder %s25_s26, 0  ;;  %p36_p2 = scmp.eq.s32.totalorder %s910_s21, 0 }
   0x9   : > { %p41_p3 = scmp.ne.s32.totalorder %s902_s19, %s898_s18  ;;  %p42_p4 = scmp.eq.s32.totalorder %s968_s22, 0 }
   0xa   : > { %s984_s27 = scalar_select %p26_p1, %s906_s20, %s28_s25  }
   0xb   : > { %p986_p5 = por %p36_p2, %p35_p0  ;;  %p990_p6 = por %p42_p4, %p41_p3 }
   0xc   : > { %p149_p7 = scmp.eq.s32.totalorder %s968_s22, 1  ;;  %p155_p8 = scmp.eq.s32.totalorder %s704_s23, 1 }
   0xd   : > { %p740_p10 = scmp.lt.s32.totalorder %s910_s21, 2  ;;  %s187_s7 = sand.u32 1, %s906_s20  }
   0xe   : > { %p997_p11 = por %p149_p7, %p35_p0  ;;  %p1001_p12 = por %p155_p8, %p41_p3 }
   0xf   : > { %s726_s8 = sshll.u32 %s910_s21, 7  ;;  %s707_s9 = sshll.u32 %s187_s7, 7 }
  0x10   : > { %s196_s12 = scalar_lea.hbm %s1326_s0, %s726_s8  ;;  %s191_s14 = scalar_lea.vmem [#allocation2], %s707_s9 }
  0x11   : > { %s197_s13 = sshll.u32 %s196_s12, 4  ;;  %s199_s15 = sshll.u32 %s191_s14, 4  ;;  %s198_s13 = int_to_ptr.hbm [resolvable:$true] %s197_s13  ;;  %s200_s15 = int_to_ptr.vmem [resolvable:$true] %s199_s15 }
  0x12   : > { %p1012_p13 = pnand %p740_p10, %p986_p5  ;;  %p710_p0 = scmp.ge.s32.totalorder %s910_s21, 1 }
  0x13   : > { %p207_p1 = scmp.lt.s32.totalorder %s910_s21, 3  ;;  %s188_s17 = scalar_lea.sflag [#allocation3], %s187_s7 }
  0x14   : > { %s814_s23 = sshra.s32 %s198_s13, 4  ;;  %p818_p3 = pneg %p1012_p13  ;;  %s815_s23 = int_to_ptr.hbm [resolvable:$true] %s814_s23 }
  0x15   : > { %s816_s25 = scalar_lea.hbm %s815_s23, 128  ;;  %s821_s28 = scalar_lea.hbm %s1326_s0, 256 }
  0x16   : > { %p817_p2 = scmp.ne.s32.totalorder %s815_s23, %s816_s25  ;;  %p822_p5 = scmp.lt.s32.totalorder %s815_s23, %s1326_s0 }
  0x17   : > { %p823_p8 = scmp.lt.s32.totalorder %s821_s28, %s816_s25 }
  0x18   : > { %p819_p4 = pnand %p818_p3, %p817_p2 }
  0x19   : > { %p824_p10 = por %p823_p8, %p822_p5 }
  0x1a   : > { %p820_p7 = pneg %p819_p4 }
  0x1c   : > { %p825_p9 = pnand %p824_p10, %p820_p7 }
  0x1e   : > { %828 = shalt.err (!%p825_p9)
}
  0x1f   : > { %s912_s7 = smov 256   ;;  %s913_s11 = smov 16  }
  0x20   : > { %735 = dma.hbm_to_vmem [thread:$0]  (!%p1012_p13), %s198_s13, 2048, %s200_s15, %s188_s17, %s912_s7, %s912_s7, %s913_s11  }
  0x21   : > { %p208_p2 = pnand %p710_p0, %p207_p1 }
  0x22   : > { %s1033_s12 = sand.u32 (!%p208_p2), 1, %s902_s19  }
  0x23   : > { %211 = sbr.rel (%p208_p2) target bundleno = 496 (0x1f0), region = 40  ;;  %s711_s14 = sshll.u32 (!%p208_p2), %s1033_s12, 7 }
  0x24   : > { %s214_s23 = scalar_lea.sflag (!%p208_p2), [#allocation3], %s1033_s12  ;;  %s217_s25 = scalar_lea.vmem (!%p208_p2), [#allocation2], %s711_s14 }
  0x28   : > { %889 = dma.done.wait (%p990_p6), %s214_s23, 2048  }
  0x29   : > { %891 = vsyncadd (%p990_p6), %s214_s23, 4294965248  ;;  %v1043_v0 = vld [vmem:[%s217_s25] sm:$0xff]  ;;  %v1045_v1 = vld [vmem:[%s217_s25 + $0x8] sm:$0xff]  ;;  %vm309_vm0 = vcmask 31744   ;;  %s1260_s9 = scalar_lea.vmem [#allocation5], %s711_s14  ;;  %s727_s14 = sshll.u32 %s968_s22, 7 }
  0x2a   : > { %v1047_v2 = vld [vmem:[%s217_s25 + $0x20] sm:$0xff]  ;;  %v261_v3 = vadd.f32 %v1045_v1, %v1043_v0  ;;  %v1051_v4 = vld [vmem:[%s217_s25 + $0x28] sm:$0xff]  ;;  %v1061_v9 = vld [vmem:[%s217_s25 + $0x10] sm:$0xff]  ;;  %s627_s11 = scalar_lea.hbm %s1331_s5, %s727_s14  ;;  %s628_s23 = sshll.u32 %s1260_s9, 4  ;;  %s629_s23 = int_to_ptr.vmem [resolvable:$true] %s628_s23 }
  0x2b   : > { %v1053_v5 = vld [vmem:[%s217_s25 + $0x40] sm:$0xff]  ;;  %v1055_v6 = vld [vmem:[%s217_s25 + $0x48] sm:$0xff]  ;;  %v267_v7 = vadd.f32 %v1051_v4, %v1047_v2  ;;  %v1063_v10 = vld [vmem:[%s217_s25 + $0x18] sm:$0xff]  ;;  %s616_s22 = scalar_lea.sflag [#allocation4], %s1033_s12  ;;  %s864_s17 = scalar_lea.hbm %s1331_s5, 256 }
  0x2c   : > { %v273_v8 = vadd.f32 %v1055_v6, %v1053_v5  ;;  %262 = vadd.xlane.f32.xlu0 %v261_v3  ;;  %v1065_v11 = vld [vmem:[%s217_s25 + $0x30] sm:$0xff]  ;;  %v1067_v12 = vld [vmem:[%s217_s25 + $0x38] sm:$0xff]  ;;  %v264_v15 = vadd.f32 %v1063_v10, %v1061_v9  ;;  %v1079_v18 = vld [vmem:[%s217_s25 + $0x60] sm:$0xff] }
  0x2d   : > { %268 = vadd.xlane.f32.xlu1 %v267_v7  ;;  %v1069_v13 = vld [vmem:[%s217_s25 + $0x50] sm:$0xff]  ;;  %v1071_v14 = vld [vmem:[%s217_s25 + $0x58] sm:$0xff]  ;;  %v270_v16 = vadd.f32 %v1067_v12, %v1065_v11  ;;  %v1081_v19 = vld [vmem:[%s217_s25 + $0x68] sm:$0xff] }
  0x2e   : > { %274 = vadd.xlane.f32.xlu2 %v273_v8  ;;  %v276_v17 = vadd.f32 %v1071_v14, %v1069_v13  ;;  %v1083_v20 = vld [vmem:[%s217_s25 + $0x70] sm:$0xff]  ;;  %v1085_v21 = vld [vmem:[%s217_s25 + $0x78] sm:$0xff]  ;;  %v279_v22 = vadd.f32 %v1081_v19, %v1079_v18  ;;  %v293_v28 = vld [vmem:[%s1327_s1] sm:$0xff]  ;;  %s630_s25 = sshll.u32 %s627_s11, 4  ;;  %s631_s25 = int_to_ptr.hbm [resolvable:$true] %s630_s25 }
  0x2f   : > { %v282_v23 = vadd.f32 %v1085_v21, %v1083_v20  ;;  %v295_v30 = vld [vmem:[%s1327_s1 + $0x10] sm:$0xff]  ;;  %v294_v31 = vld [vmem:[%s1327_s1 + $0x8] sm:$0xff]  ;;  %v296_v35 = vld [vmem:[%s1327_s1 + $0x18] sm:$0xff]  ;;  %s858_s29 = sshra.s32 %s631_s25, 4  ;;  %s859_s29 = int_to_ptr.hbm [resolvable:$true] %s858_s29 }
  0x30   : > { %v297_v43 = vld [vmem:[%s1327_s1 + $0x20] sm:$0xff]  ;;  %v298_v45 = vld [vmem:[%s1327_s1 + $0x28] sm:$0xff]  ;;  %v299_v54 = vld [vmem:[%s1327_s1 + $0x30] sm:$0xff]  ;;  %s860_s13 = scalar_lea.hbm %s859_s29, 128  ;;  %p865_p0 = scmp.lt.s32.totalorder %s859_s29, %s1331_s5 }
  0x31   : > { %v300_v57 = vld [vmem:[%s1327_s1 + $0x38] sm:$0xff]  ;;  %p861_p6 = scmp.ne.s32.totalorder %s859_s29, %s860_s13  ;;  %p866_p1 = scmp.lt.s32.totalorder %s864_s17, %s860_s13 }
  0x33   : > { %p862_p9 = pnand %p861_p6, %p997_p11  ;;  %p867_p3 = por %p866_p1, %p865_p0 }
  0x34   : > { %265 = vadd.xlane.f32.xlu0 %v264_v15 }
  0x35   : > { %271 = vadd.xlane.f32.xlu1 %v270_v16  ;;  %p863_p13 = pneg %p862_p9 }
  0x36   : > { %277 = vadd.xlane.f32.xlu2 %v276_v17 }
  0x37   : > { %p868_p4 = pnand %p867_p3, %p863_p13 }
  0x3c   : > { %280 = vadd.xlane.f32.xlu0 %v279_v22 }
  0x3d   : > { %283 = vadd.xlane.f32.xlu1 %v282_v23 }
  0x9f   : > { %v263_v24 = vpop.xlane.xlu0 %262 }
  0xa0   : > { %v269_v25 = vpop.xlane.xlu1 %268  ;;  %v285_v27 = vmul.f32 0.00390625, %v263_v24 }
  0xa1   : > { %v275_v26 = vpop.xlane.xlu2 %274  ;;  %v287_v29 = vmul.f32 0.00390625, %v269_v25 }
  0xa2   : > { %v301_v33 = vmul.f32 %v293_v28, %v285_v27  ;;  %v289_v40 = vmul.f32 0.00390625, %v275_v26  ;;  %v331_v28 = vld [vmem:[%s1328_s2] sm:$0x1] }
  0xa3   : > { %v303_v39 = vmul.f32 %v295_v30, %v287_v29 }
  0xa4   : > { %v310_v46 = vsel %vm309_vm0, %v301_v33, 0.0  ;;  %v305_v50 = vmul.f32 %v297_v43, %v289_v40  ;;  %v335_v33 = vld [vmem:[%s1329_s3 + $0x8] sm:$0xff]  ;;  %v338_v43 = vld [vmem:[%s1329_s3 + $0x20] sm:$0xff] }
  0xa5   : > { %v313_v49 = vsel %vm309_vm0, %v303_v39, 0.0 }
  0xa6   : > { %v317_v61 = vsel %vm309_vm0, %v305_v50, 0.0 }
  0xa7   : > { %v266_v32 = vpop.xlane.xlu0 %265 }
  0xa8   : > { %v286_v34 = vmul.f32 0.00390625, %v266_v32  ;;  %v272_v36 = vpop.xlane.xlu1 %271  ;;  %v336_v32 = vld [vmem:[%s1329_s3 + $0x10] sm:$0xff] }
  0xa9   : > { %v278_v37 = vpop.xlane.xlu2 %277  ;;  %v288_v38 = vmul.f32 0.00390625, %v272_v36 }
  0xaa   : > { %v302_v41 = vmul.f32 %v294_v31, %v286_v34  ;;  %v290_v42 = vmul.f32 0.00390625, %v278_v37  ;;  %v334_v34 = vld [vmem:[%s1329_s3] sm:$0xff] }
  0xab   : > { %v304_v44 = vmul.f32 %v296_v35, %v288_v38 }
  0xac   : > { %v311_v47 = vsel %vm309_vm0, %v302_v41, 0.0  ;;  %v306_v52 = vmul.f32 %v298_v45, %v290_v42  ;;  %v339_v42 = vld [vmem:[%s1329_s3 + $0x28] sm:$0xff] }
  0xad   : > { %v312_v48 = vadd.f32 %v311_v47, %v310_v46  ;;  %v315_v51 = vsel %vm309_vm0, %v304_v44, 0.0  ;;  %v337_v44 = vld [vmem:[%s1329_s3 + $0x18] sm:$0xff] }
  0xae   : > { %v319_v62 = vsel %vm309_vm0, %v306_v52, 0.0  ;;  %v340_v52 = vld [vmem:[%s1329_s3 + $0x30] sm:$0xff] }
  0xaf   : > { %v314_v53 = vadd.f32 %v313_v49, %v312_v48  ;;  %v281_v55 = vpop.xlane.xlu0 %280 }
  0xb0   : > { %v291_v56 = vmul.f32 0.00390625, %v281_v55  ;;  %v284_v58 = vpop.xlane.xlu1 %283 }
  0xb1   : > { %v316_v59 = vadd.f32 %v315_v51, %v314_v53  ;;  %v292_v60 = vmul.f32 0.00390625, %v284_v58  ;;  %v341_v51 = vld [vmem:[%s1329_s3 + $0x38] sm:$0xff]  ;;  %v376_v58 = vld [vmem:[%s1330_s4 + $0x8] sm:$0xff] }
  0xb2   : > { %v307_v63 = vmul.f32 %v299_v54, %v291_v56 }
  0xb3   : > { %v318_v3 = vadd.f32 %v317_v61, %v316_v59  ;;  %v308_v7 = vmul.f32 %v300_v57, %v292_v60  ;;  %v377_v57 = vld [vmem:[%s1330_s4 + $0x10] sm:$0xff]  ;;  %v375_v59 = vld [vmem:[%s1330_s4] sm:$0xff] }
  0xb4   : > { %v321_v8 = vsel %vm309_vm0, %v307_v63, 0.0 }
  0xb5   : > { %v320_v15 = vadd.f32 %v319_v62, %v318_v3  ;;  %v323_v16 = vsel %vm309_vm0, %v308_v7, 0.0  ;;  %v914_v7 = vmov 0  }
  0xb6   : > { %781 = vset.pattern.permute.xlu0 %v914_v7  ;;  %780 = vset.pattern.permute.xlu2 %v914_v7 }
  0xb7   : > { %v322_v17 = vadd.f32 %v321_v8, %v320_v15  ;;  %779 = vset.pattern.permute.xlu1 %v914_v7 }
  0xb9   : > { %v324_v22 = vadd.f32 %v323_v16, %v322_v17 }
  0xbb   : > { %v325_v23 = vrot.slane %v324_v22, 4 }
  0xbd   : > { %v326_v24 = vadd.f32 %v325_v23, %v324_v22  ;;  %v380_v22 = vld [vmem:[%s1330_s4 + $0x28] sm:$0xff]  ;;  %v379_v23 = vld [vmem:[%s1330_s4 + $0x20] sm:$0xff] }
  0xbf   : > { %v327_v25 = vrot.slane %v326_v24, 2 }
  0xc1   : > { %v328_v26 = vadd.f32 %v327_v25, %v326_v24  ;;  %v378_v24 = vld [vmem:[%s1330_s4 + $0x18] sm:$0xff] }
  0xc3   : > { %v329_v27 = vrot.slane %v328_v26, 1 }
  0xc5   : > { %v330_v29 = vadd.f32 %v329_v27, %v328_v26 }
  0xc7   : > { %v332_v30 = vadd.f32 %v331_v28, %v330_v29 }
  0xc9   : > { %v333_v31 = vmax.f32 %v332_v30, 0.0 }
  0xcb   : > { %v342_v35 = vperm.slane %v333_v31, 0 }
  0xcd   : > { %v345_v36 = vmul.f32 %v342_v35, %v336_v32  ;;  %v344_v37 = vmul.f32 %v342_v35, %v335_v33  ;;  %v343_v38 = vmul.f32 %v342_v35, %v334_v34  ;;  %v348_v45 = vmul.f32 %v342_v35, %v339_v42 }
  0xce   : > { %v347_v46 = vmul.f32 %v342_v35, %v338_v43  ;;  %v346_v47 = vmul.f32 %v342_v35, %v337_v44  ;;  %v350_v53 = vmul.f32 %v342_v35, %v341_v51  ;;  %v349_v54 = vmul.f32 %v342_v35, %v340_v52 }
  0xcf   : > { %v357_v39 = vsel %vm309_vm0, %v345_v36, 0.0  ;;  %v354_v40 = vsel %vm309_vm0, %v344_v37, 0.0  ;;  %v351_v41 = vsel %vm309_vm0, %v343_v38, 0.0  ;;  %v366_v48 = vsel %vm309_vm0, %v348_v45, 0.0 }
  0xd0   : > { %358 = vadd.xlane.f32.xlu1 %v357_v39  ;;  %355 = vadd.xlane.f32.xlu0 %v354_v40  ;;  %v363_v49 = vsel %vm309_vm0, %v347_v46, 0.0  ;;  %v360_v50 = vsel %vm309_vm0, %v346_v47, 0.0  ;;  %v372_v55 = vsel %vm309_vm0, %v350_v53, 0.0  ;;  %v369_v56 = vsel %vm309_vm0, %v349_v54, 0.0  ;;  %v382_v40 = vld [vmem:[%s1330_s4 + $0x38] sm:$0xff] }
  0xd1   : > { %352 = vadd.xlane.f32.xlu2 %v351_v41  ;;  %v381_v41 = vld [vmem:[%s1330_s4 + $0x30] sm:$0xff] }
  0xd8   : > { %367 = vadd.xlane.f32.xlu1 %v366_v48  ;;  %364 = vadd.xlane.f32.xlu0 %v363_v49 }
  0xd9   : > { %361 = vadd.xlane.f32.xlu2 %v360_v50 }
  0xe0   : > { %373 = vadd.xlane.f32.xlu0 %v372_v55 }
  0xe1   : > { %370 = vadd.xlane.f32.xlu2 %v369_v56 }
 0x143   : > { %v359_v60 = vpop.xlane.xlu1 %358  ;;  %v356_v61 = vpop.xlane.xlu0 %355 }
 0x144   : > { %v385_v62 = vadd.f32 %v377_v57, %v359_v60  ;;  %v384_v63 = vadd.f32 %v376_v58, %v356_v61  ;;  %v353_v3 = vpop.xlane.xlu2 %352 }
 0x145   : > { %v383_v8 = vadd.f32 %v375_v59, %v353_v3 }
 0x146   : > { %v715_v15 = vmul.f32 -1.442695, %v385_v62  ;;  %v714_v16 = vmul.f32 -1.442695, %v384_v63 }
 0x147   : > { %v713_v17 = vmul.f32 -1.442695, %v383_v8 }
 0x148   : > { %782 = vpow2.f32 %v715_v15 }
 0x149   : > { %784 = vpow2.f32 %v714_v16 }
 0x14a   : > { %786 = vpow2.f32 %v713_v17 }
 0x14b   : > { %v368_v25 = vpop.xlane.xlu1 %367  ;;  %v365_v26 = vpop.xlane.xlu0 %364 }
 0x14c   : > { %v388_v27 = vadd.f32 %v380_v22, %v368_v25  ;;  %v387_v28 = vadd.f32 %v379_v23, %v365_v26  ;;  %v362_v29 = vpop.xlane.xlu2 %361 }
 0x14d   : > { %v386_v30 = vadd.f32 %v378_v24, %v362_v29 }
 0x14e   : > { %v783_v31 = vpop.eup %782  ;;  %v718_v32 = vmul.f32 -1.442695, %v388_v27  ;;  %v717_v37 = vmul.f32 -1.442695, %v387_v28 }
 0x14f   : > { %v785_v33 = vpop.eup %784  ;;  %v417_v34 = vadd.f32 1.0, %v783_v31  ;;  %v716_v39 = vmul.f32 -1.442695, %v386_v30 }
 0x150   : > { %v787_v35 = vpop.eup %786  ;;  %v1176_v36 = vadd.f32 1.0, %v785_v33  ;;  %788 = vpow2.f32 %v718_v32 }
 0x151   : > { %790 = vrcp.f32 %v417_v34  ;;  %v1178_v38 = vadd.f32 1.0, %v787_v35  ;;  %v462_v48 = vand.u32 2147483647, %v417_v34  ;;  %vm458_vm1 = vweird.f32 %v417_v34 }
 0x152   : > { %792 = vrcp.f32 %v1176_v36  ;;  %v464_v54 = vand.u32 2147483648, %v417_v34  ;;  %vm443_vm2 = vweird.f32 %v1176_v36  ;;  %v447_v57 = vand.u32 2147483647, %v1176_v36 }
 0x153   : > { %794 = vrcp.f32 %v1178_v38  ;;  %v374_v42 = vpop.xlane.xlu0 %373  ;;  %vm1194_vm3 = vcmp.eq.f32.partialorder %v462_v48, 8.507059e+37  ;;  %v449_v7 = vand.u32 2147483648, %v1176_v36  ;;  %v432_v8 = vand.u32 2147483647, %v1178_v38 }
 0x154   : > { %796 = vpow2.f32 %v717_v37  ;;  %v390_v43 = vadd.f32 %v382_v40, %v374_v42  ;;  %v371_v44 = vpop.xlane.xlu2 %370  ;;  %v434_v23 = vand.u32 2147483648, %v1178_v38  ;;  %v465_v29 = vor.u32 1.1754944e-38, %v464_v54 }
 0x155   : > { %798 = vpow2.f32 %v716_v39  ;;  %v389_v45 = vadd.f32 %v381_v41, %v371_v44  ;;  %vm428_vm8 = vweird.f32 %v1178_v38  ;;  %vm448_vm10 = vcmp.eq.f32.partialorder %v447_v57, 8.507059e+37 }
 0x156   : > { %v789_v46 = vpop.eup %788  ;;  %v720_v47 = vmul.f32 -1.442695, %v390_v43  ;;  %v450_v33 = vor.u32 1.1754944e-38, %v449_v7  ;;  %v435_v40 = vor.u32 1.1754944e-38, %v434_v23  ;;  %vm433_vm12 = vcmp.eq.f32.partialorder %v432_v8, 8.507059e+37 }
 0x157   : > { %v791_v49 = vpop.eup %790  ;;  %v1188_v50 = vadd.f32 1.0, %v789_v46  ;;  %v719_v51 = vmul.f32 -1.442695, %v389_v45 }
 0x158   : > { %v793_v52 = vpop.eup %792  ;;  %800 = vpow2.f32 %v720_v47  ;;  %v454_v53 = vmul.f32 %v791_v49, %v417_v34  ;;  %vm459_vm4 = vweird.f32 %v791_v49 }
 0x159   : > { %v795_v55 = vpop.eup %794  ;;  %802 = vrcp.f32 %v1188_v50  ;;  %v439_v56 = vmul.f32 %v793_v52, %v1176_v36  ;;  %vm444_vm5 = vweird.f32 %v793_v52  ;;  %vm460_vm7 = vmor %vm458_vm1, %vm459_vm4 }
 0x15a   : > { %v797_v58 = vpop.eup %796  ;;  %804 = vpow2.f32 %v719_v51  ;;  %v455_v59 = vsub.f32 1.0, %v454_v53  ;;  %v424_v61 = vmul.f32 %v795_v55, %v1178_v38  ;;  %vm429_vm6 = vweird.f32 %v795_v55  ;;  %vm445_vm9 = vmor %vm443_vm2, %vm444_vm5 }
 0x15b   : > { %v799_v62 = vpop.eup %798  ;;  %v1199_v63 = vadd.f32 1.0, %v797_v58  ;;  %v440_v3 = vsub.f32 1.0, %v439_v56  ;;  %vm430_vm11 = vmor %vm428_vm8, %vm429_vm6  ;;  %vm503_vm8 = vweird.f32 %v1188_v50 }
 0x15c   : > { %v1203_v15 = vadd.f32 1.0, %v799_v62  ;;  %v456_v16 = vmul.f32 %v791_v49, %v455_v59  ;;  %v425_v17 = vsub.f32 1.0, %v424_v61 }
 0x15d   : > { %806 = vrcp.f32 %v1199_v63  ;;  %v441_v22 = vmul.f32 %v793_v52, %v440_v3  ;;  %v494_v48 = vand.u32 2147483648, %v1199_v63  ;;  %v492_v54 = vand.u32 2147483647, %v1199_v63 }
 0x15e   : > { %v801_v24 = vpop.eup %800  ;;  %808 = vrcp.f32 %v1203_v15  ;;  %v457_v25 = vadd.f32 %v791_v49, %v456_v16  ;;  %v426_v26 = vmul.f32 %v795_v55, %v425_v17  ;;  %v477_v58 = vand.u32 2147483647, %v1203_v15 }
 0x15f   : > { %v1208_v27 = vpop.eup %802  ;;  %v1210_v28 = vadd.f32 1.0, %v801_v24  ;;  %v442_v30 = vadd.f32 %v793_v52, %v441_v22  ;;  %vm488_vm15 = vweird.f32 %v1199_v63  ;;  %vm473_vm0 = vweird.f32 %v1203_v15 }
 0x160   : > { %v805_v31 = vpop.eup %804  ;;  %v461_v32 = vsel %vm460_vm7, %v791_v49, %v457_v25  ;;  %v427_v35 = vadd.f32 %v795_v55, %v426_v26  ;;  %v499_v43 = vmul.f32 %v1208_v27, %v1188_v50  ;;  %v495_v61 = vor.u32 1.1754944e-38, %v494_v48 }
 0x161   : > { %v1217_v37 = vadd.f32 1.0, %v805_v31  ;;  %v466_v39 = vsel %vm1194_vm3, %v465_v29, %v461_v32  ;;  %v446_v34 = vsel %vm445_vm9, %v793_v52, %v442_v30  ;;  %810 = vrcp.f32 %v1210_v28 }
 0x162   : > { %555 = vperm.xlu0 %781, %v466_v39   ;;  %v451_v38 = vsel %vm448_vm10, %v450_v33, %v446_v34  ;;  %v431_v41 = vsel %vm430_vm11, %v795_v55, %v427_v35  ;;  %v500_v51 = vsub.f32 1.0, %v499_v43  ;;  %v479_v55 = vand.u32 2147483648, %v1203_v15 }
 0x163   : > { %v807_v36 = vpop.eup %806  ;;  %812 = vrcp.f32 %v1217_v37  ;;  %550 = vperm.xlu2 %780, %v451_v38   ;;  %v436_v42 = vsel %vm433_vm12, %v435_v40, %v431_v41  ;;  %vm493_vm2 = vcmp.eq.f32.partialorder %v492_v54, 8.507059e+37  ;;  %vm478_vm4 = vcmp.eq.f32.partialorder %v477_v58, 8.507059e+37 }
 0x164   : > { %v809_v44 = vpop.eup %808  ;;  %545 = vperm.xlu1 %779, %v436_v42   ;;  %v484_v45 = vmul.f32 %v807_v36, %v1199_v63  ;;  %vm489_vm13 = vweird.f32 %v807_v36  ;;  %v501_v3 = vmul.f32 %v1208_v27, %v500_v51  ;;  %v480_v16 = vor.u32 1.1754944e-38, %v479_v55 }
 0x165   : > { %v469_v46 = vmul.f32 %v809_v44, %v1203_v15  ;;  %vm474_vm14 = vweird.f32 %v809_v44  ;;  %vm490_vm1 = vmor %vm488_vm15, %vm489_vm13  ;;  %v524_v63 = vand.u32 2147483648, %v1217_v37  ;;  %v522_v25 = vand.u32 2147483647, %v1217_v37 }
 0x166   : > { %v485_v47 = vsub.f32 1.0, %v484_v45  ;;  %vm475_vm3 = vmor %vm473_vm0, %vm474_vm14  ;;  %v502_v26 = vadd.f32 %v1208_v27, %v501_v3  ;;  %vm504_vm6 = vweird.f32 %v1208_v27  ;;  %v509_v30 = vand.u32 2147483648, %v1188_v50 }
 0x167   : > { %v470_v49 = vsub.f32 1.0, %v469_v46  ;;  %v1229_v52 = vpop.eup %810  ;;  %vm518_vm7 = vweird.f32 %v1217_v37  ;;  %v507_v32 = vand.u32 2147483647, %v1188_v50  ;;  %v525_v33 = vor.u32 1.1754944e-38, %v524_v63  ;;  %vm505_vm10 = vmor %vm503_vm8, %vm504_vm6 }
 0x168   : > { %v486_v53 = vmul.f32 %v807_v36, %v485_v47  ;;  %v529_v7 = vmul.f32 %v1229_v52, %v1210_v28  ;;  %vm523_vm11 = vcmp.eq.f32.partialorder %v522_v25, 8.507059e+37  ;;  %v506_v39 = vsel %vm505_vm10, %v1208_v27, %v502_v26 }
 0x169   : > { %v813_v56 = vpop.eup %812  ;;  %v471_v57 = vmul.f32 %v809_v44, %v470_v49  ;;  %v510_v38 = vor.u32 1.1754944e-38, %v509_v30  ;;  %vm508_vm12 = vcmp.eq.f32.partialorder %v507_v32, 8.507059e+37  ;;  %vm534_vm13 = vweird.f32 %v1229_v52 }
 0x16a   : > { %v487_v59 = vadd.f32 %v807_v36, %v486_v53  ;;  %v514_v60 = vmul.f32 %v813_v56, %v1217_v37  ;;  %vm519_vm5 = vweird.f32 %v813_v56  ;;  %v530_v29 = vsub.f32 1.0, %v529_v7 }
 0x16b   : > { %v472_v62 = vadd.f32 %v809_v44, %v471_v57  ;;  %vm520_vm9 = vmor %vm518_vm7, %vm519_vm5  ;;  %v511_v41 = vsel %vm508_vm12, %v510_v38, %v506_v39  ;;  %v539_v50 = vand.u32 2147483648, %v1210_v28  ;;  %vm533_vm14 = vweird.f32 %v1210_v28 }
 0x16c   : > { %v491_v8 = vsel %vm490_vm1, %v807_v36, %v487_v59  ;;  %v515_v17 = vsub.f32 1.0, %v514_v60  ;;  %v531_v40 = vmul.f32 %v1229_v52, %v530_v29  ;;  %v537_v36 = vand.u32 2147483647, %v1210_v28  ;;  %vm535_vm15 = vmor %vm533_vm14, %vm534_vm13 }
 0x16d   : > { %v496_v22 = vsel %vm493_vm2, %v495_v61, %v491_v8  ;;  %v476_v23 = vsel %vm475_vm3, %v809_v44, %v472_v62  ;;  %v540_v42 = vor.u32 1.1754944e-38, %v539_v50 }
 0x16e   : > { %565 = vperm.xlu1 %779, %v496_v22   ;;  %v481_v15 = vsel %vm478_vm4, %v480_v16, %v476_v23  ;;  %v516_v24 = vmul.f32 %v813_v56, %v515_v17  ;;  %v532_v37 = vadd.f32 %v1229_v52, %v531_v40  ;;  %vm538_vm0 = vcmp.eq.f32.partialorder %v537_v36, 8.507059e+37 }
 0x16f   : > { %560 = vperm.xlu2 %780, %v481_v15  }
 0x170   : > { %v517_v31 = vadd.f32 %v813_v56, %v516_v24  ;;  %v536_v27 = vsel %vm535_vm15, %v1229_v52, %v532_v37 }
 0x171   : > { %v541_v43 = vsel %vm538_vm0, %v540_v42, %v536_v27 }
 0x172   : > { %v521_v35 = vsel %vm520_vm9, %v813_v56, %v517_v31 }
 0x173   : > { %v526_v34 = vsel %vm523_vm11, %v525_v33, %v521_v35 }
 0x176   : > { %575 = vperm.xlu1 %779, %v526_v34  }
 0x177   : > { %570 = vperm.xlu2 %780, %v511_v41  }
 0x17f   : > { %580 = vperm.xlu2 %780, %v541_v43  }
 0x1bd   : > { %v551_v44 = vpop.permute.xlu2 %550 }
 0x1be   : > { %v585_v45 = vmul.f32 %v551_v44, %v1061_v9  ;;  %v586_v46 = vmul.f32 %v551_v44, %v1063_v10 }
 0x1c0   : > { %601 = vst [vmem:[%s1260_s9 + $0x10] sm:$0xff] %v585_v45 }
 0x1c1   : > { %602 = vst [vmem:[%s1260_s9 + $0x18] sm:$0xff] %v586_v46 }
 0x1c9   : > { %v561_v28 = vpop.permute.xlu2 %560 }
 0x1ca   : > { %v589_v47 = vmul.f32 %v561_v28, %v1065_v11  ;;  %v590_v9 = vmul.f32 %v561_v28, %v1067_v12 }
 0x1cc   : > { %605 = vst [vmem:[%s1260_s9 + $0x30] sm:$0xff] %v589_v47 }
 0x1cd   : > { %606 = vst [vmem:[%s1260_s9 + $0x38] sm:$0xff] %v590_v9 }
 0x1d1   : > { %v571_v10 = vpop.permute.xlu2 %570 }
 0x1d2   : > { %v593_v48 = vmul.f32 %v571_v10, %v1069_v13  ;;  %v594_v49 = vmul.f32 %v571_v10, %v1071_v14 }
 0x1d4   : > { %609 = vst [vmem:[%s1260_s9 + $0x50] sm:$0xff] %v593_v48  ;;  %v556_v51 = vpop.permute.xlu0 %555 }
 0x1d5   : > { %610 = vst [vmem:[%s1260_s9 + $0x58] sm:$0xff] %v594_v49  ;;  %v587_v11 = vmul.f32 %v556_v51, %v1047_v2  ;;  %v588_v52 = vmul.f32 %v556_v51, %v1051_v4 }
 0x1d6   : > { %v546_v12 = vpop.permute.xlu1 %545 }
 0x1d7   : > { %603 = vst [vmem:[%s1260_s9 + $0x20] sm:$0xff] %v587_v11  ;;  %v583_v53 = vmul.f32 %v546_v12, %v1043_v0  ;;  %v584_v13 = vmul.f32 %v546_v12, %v1045_v1 }
 0x1d8   : > { %604 = vst [vmem:[%s1260_s9 + $0x28] sm:$0xff] %v588_v52 }
 0x1d9   : > { %599 = vst [vmem:[%s1260_s9] sm:$0xff] %v583_v53  ;;  %v581_v14 = vpop.permute.xlu2 %580 }
 0x1da   : > { %600 = vst [vmem:[%s1260_s9 + $0x8] sm:$0xff] %v584_v13  ;;  %v597_v54 = vmul.f32 %v581_v14, %v1083_v20  ;;  %v598_v55 = vmul.f32 %v581_v14, %v1085_v21 }
 0x1dc   : > { %613 = vst [vmem:[%s1260_s9 + $0x70] sm:$0xff] %v597_v54 }
 0x1dd   : > { %614 = vst [vmem:[%s1260_s9 + $0x78] sm:$0xff] %v598_v55 }
 0x1e0   : > { %v566_v2 = vpop.permute.xlu1 %565 }
 0x1e1   : > { %v591_v0 = vmul.f32 %v566_v2, %v1053_v5  ;;  %v592_v1 = vmul.f32 %v566_v2, %v1055_v6 }
 0x1e3   : > { %607 = vst [vmem:[%s1260_s9 + $0x40] sm:$0xff] %v591_v0 }
 0x1e4   : > { %608 = vst [vmem:[%s1260_s9 + $0x48] sm:$0xff] %v592_v1 }
 0x1e8   : > { %v576_v4 = vpop.permute.xlu1 %575 }
 0x1e9   : > { %v595_v20 = vmul.f32 %v576_v4, %v1079_v18  ;;  %v596_v21 = vmul.f32 %v576_v4, %v1081_v19 }
 0x1eb   : > { %611 = vst [vmem:[%s1260_s9 + $0x60] sm:$0xff] %v595_v20 }
 0x1ec   : > { %612 = vst [vmem:[%s1260_s9 + $0x68] sm:$0xff] %v596_v21 }
 0x1ed   : > { %871 = shalt.err (!%p868_p4)
}
 0x1ee   : > { %s915_s12 = smov 256   ;;  %s916_s28 = smov 16  }
 0x1ef   : > { %730 = dma.vmem_to_hbm [thread:$0]  (%p997_p11), %s629_s23, 2048, %s631_s25, %s616_s22, %s915_s12, %s915_s12, %s916_s28  }
 0x1f0 PF: > { %s645_s9 = sand.u32 1, %s898_s18   ;;  %p1339_p7 = scmp.ge.s32.totalorder %s910_s21, 2 }
 0x1f1   : > { %s646_s14 = scalar_lea.sflag [#allocation4], %s645_s9 }
 0x1f2   : > { %p737_p5 = pnand %p1339_p7, %p1001_p12 }
 0x1f4   : > { %p738_p8 = pneg %p737_p5 }
 0x1f6   : > { %893 = dma.done.wait (%p738_p8), %s646_s14, 2048  }
 0x1f7   : > { %895 = vsyncadd (%p738_p8), %s646_s14, 4294965248  ;;  %p18_p10 = scmp.ge.s32.totalorder %s972_s24, 4   ;;  %s1340_s18 = smov %s902_s19 }
 0x1f8   : > { %s1341_s19 = smov %s906_s20  ;;  %s1342_s20 = smov %s984_s27 }
 0x1f9   : > { %s1343_s21 = smov %s972_s24  ;;  %20 = sbr.rel (!%p18_p10) target bundleno = 5 (0x5), region = 85 }
 0x1fe   :  { %652 = vsyncpa [#allocation3], 1 }
 0x1ff   :  { %654 = vsyncpa [#allocation3 + $0x1], 1 }
 0x200   :  { %655 = vsyncpa [#allocation4], 1 }
 0x201   :  { %657 = vsyncpa [#allocation4 + $0x1], 1 }

</bundles_post_ra>
